<compile_context>
chip_gen: v7x
topology: tpu7x:2x2x1
jax: 0.10.0
libtpu: 0.0.40
codegen_flags: <defaults>
</compile_context>

<pallas_src>
import functools

import jax
import jax.numpy as jnp
from jax.experimental import pallas as pl
from jax.experimental.pallas import tpu as pltpu

_LANE = 128


def _round_up(n, m):
    return ((n + m - 1) // m) * m


def _cdiv(a, b):
    return (a + b - 1) // b


def _num_tensorcores():
    """Best effort: v7x has 2 TensorCores sharing the grid; v5e/v6e have 1."""
    try:
        kind = jax.devices()[0].device_kind.lower()
        if "v7" in kind or "7x" in kind:
            return 2
    except Exception:
        pass
    return 1


def _choose_block_b(batch, requested, num_tc):
    """Batch tile size (multiple of 8) and grid step count.

    Single-TC chips: one big tile (grid is a serial loop there, splitting only
    adds per-step overhead).  Two-TC chips (v7x): force an even step count so
    both TensorCores get equal work under dimension_semantics=("parallel",).
    """
    b8 = _round_up(batch, 8)
    bb = max(8, min(_round_up(requested, 8), b8))
    steps = _cdiv(b8, bb)
    if num_tc > 1 and b8 >= 16 and steps % 2 == 1:
        steps += 1
        bb = max(8, _round_up(_cdiv(b8, steps), 8))
    return bb, steps


def _autoencoder_kernel(x_ref,
                        w1_ref, b1_ref,
                        w2_ref, b2_ref,
                        w3_ref, b3_ref,
                        w4_ref, b4_ref,
                        latent_ref, recon_ref):
    """One batch tile: 4 chained bf16 matmuls (f32 acc) + ReLU / Sigmoid."""
    x = x_ref[...]                                           # bf16 [bb, in_pad]

    # Encoder
    h1 = jnp.dot(x, w1_ref[...], preferred_element_type=jnp.float32) + b1_ref[...]
    h1 = jnp.maximum(h1, 0.0)
    lat = jnp.dot(h1.astype(jnp.bfloat16), w2_ref[...],
                  preferred_element_type=jnp.float32) + b2_ref[...]
    lat = jnp.maximum(lat, 0.0)

    # Decoder
    h2 = jnp.dot(lat.astype(jnp.bfloat16), w3_ref[...],
                 preferred_element_type=jnp.float32) + b3_ref[...]
    h2 = jnp.maximum(h2, 0.0)
    logits = jnp.dot(h2.astype(jnp.bfloat16), w4_ref[...],
                     preferred_element_type=jnp.float32) + b4_ref[...]
    # sigmoid(z) == 0.5 * tanh(0.5 * z) + 0.5 : one EUP transcendental, exact.
    recon = 0.5 * jnp.tanh(0.5 * logits) + 0.5

    # Store only the true (unpadded) feature columns, in bf16.
    lat_dim = latent_ref.shape[-1]
    in_dim = recon_ref.shape[-1]
    latent_ref[...] = lat[:, :lat_dim].astype(latent_ref.dtype)
    recon_ref[...] = recon[:, :in_dim].astype(recon_ref.dtype)


def prepare_params(params):
    """Pad weights/biases to lane-multiples and cast weights to bf16 ONCE.

    Hoisted out of the per-call path (the padding/convert ops otherwise rival
    the kernel runtime for a model this small).  Weights are stored
    [in_features, out_features] so the forward is x @ W + b.
    """
    def pad_w(w, rows, cols):
        return jnp.pad(w, ((0, rows - w.shape[0]),
                           (0, cols - w.shape[1]))).astype(jnp.bfloat16)

    def pad_b(b, cols):
        b2d = jnp.asarray(b).reshape(1, -1)
        return jnp.pad(b2d, ((0, 0), (0, cols - b2d.shape[1]))).astype(jnp.float32)

    input_dim, hidden = params["w1"].shape
    latent_dim = params["w2"].shape[1]
    in_pad = _round_up(input_dim, _LANE)
    hid_pad = _round_up(hidden, _LANE)
    lat_pad = _round_up(latent_dim, _LANE)

    return {
        "w1": pad_w(params["w1"], in_pad, hid_pad),  "b1": pad_b(params["b1"], hid_pad),
        "w2": pad_w(params["w2"], hid_pad, lat_pad), "b2": pad_b(params["b2"], lat_pad),
        "w3": pad_w(params["w3"], lat_pad, hid_pad), "b3": pad_b(params["b3"], hid_pad),
        "w4": pad_w(params["w4"], hid_pad, in_pad),  "b4": pad_b(params["b4"], in_pad),
    }


@functools.partial(jax.jit, static_argnames=("latent_dim", "block_b"))
def simple_autoencoder_forward(x, prep, *, latent_dim, block_b=1024):
    """Autoencoder forward with a Pallas kernel.

    x:    [B, input_dim] float32
    prep: output of prepare_params() (padded bf16 weights, f32 biases)
    Returns (latent [B, latent_dim], reconstructed [B, input_dim]) in bf16
    (documented deviation: cast to f32 outside if the caller needs it).
    """
    B, input_dim = x.shape
    in_pad, hid_pad = prep["w1"].shape
    lat_pad = prep["w2"].shape[1]

    num_tc = _num_tensorcores()
    bb, steps = _choose_block_b(B, block_b, num_tc)
    B_pad = bb * steps
    grid = (steps,)

    # Pad only x per call (batch rows to a tile multiple, features to 128).
    # Padded rows produce garbage-but-finite outputs; they are sliced off below.
    xp = jnp.pad(x, ((0, B_pad - B), (0, in_pad - input_dim))).astype(jnp.bfloat16)

    # Weights/biases: full-array blocks, same block every grid step (resident).
    def resident(shape):
        return pl.BlockSpec(shape, lambda i: (0, 0))

    in_specs = [
        pl.BlockSpec((bb, in_pad), lambda i: (i, 0)),            # x tile
        resident((in_pad, hid_pad)),  resident((1, hid_pad)),    # W1, b1
        resident((hid_pad, lat_pad)), resident((1, lat_pad)),    # W2, b2
        resident((lat_pad, hid_pad)), resident((1, hid_pad)),    # W3, b3
        resident((hid_pad, in_pad)),  resident((1, in_pad)),     # W4, b4
    ]
    # Outputs at their TRUE feature widths (last block dim == full array dim is
    # legal); the 128-padded columns never touch HBM.
    out_specs = [
        pl.BlockSpec((bb, latent_dim), lambda i: (i, 0)),
        pl.BlockSpec((bb, input_dim), lambda i: (i, 0)),
    ]

    latent_p, recon_p = pl.pallas_call(
        _autoencoder_kernel,
        grid=grid,
        in_specs=in_specs,
        out_specs=out_specs,
        out_shape=[
            jax.ShapeDtypeStruct((B_pad, latent_dim), jnp.bfloat16),
            jax.ShapeDtypeStruct((B_pad, input_dim), jnp.bfloat16),
        ],
        compiler_params=pltpu.CompilerParams(
            dimension_semantics=("parallel",),
            # Explicit budget: resident weights (~260 KiB) + one 1024-row tile
            # (inputs/outputs double-buffered + f32 intermediates) is a few MiB,
            # comfortably under 32 MiB on v5e/v6e/v7x.
            vmem_limit_bytes=32 * 1024 * 1024,
        ),
    )(xp, prep["w1"], prep["b1"], prep["w2"], prep["b2"],
      prep["w3"], prep["b3"], prep["w4"], prep["b4"])

    # Only batch padding (if any) remains to slice off.
    return latent_p[:B], recon_p[:B]


def init_params(key, input_dim, latent_dim, hidden=128):
    """Deterministic PyTorch-style (Kaiming-uniform) init, stored as [in, out]."""
    def linear(k, fan_in, fan_out):
        kw, kb = jax.random.split(k)
        bound = 1.0 / jnp.sqrt(fan_in)
        w = jax.random.uniform(kw, (fan_in, fan_out), jnp.float32, -bound, bound)
        b = jax.random.uniform(kb, (1, fan_out), jnp.float32, -bound, bound)
        return w, b

    k1, k2, k3, k4 = jax.random.split(key, 4)
    w1, b1 = linear(k1, input_dim, hidden)
    w2, b2 = linear(k2, hidden, latent_dim)
    w3, b3 = linear(k3, latent_dim, hidden)
    w4, b4 = linear(k4, hidden, input_dim)
    return {"w1": w1, "b1": b1, "w2": w2, "b2": b2,
            "w3": w3, "b3": b3, "w4": w4, "b4": b4}


def _reference_forward(x, p):
    """Pure-JAX f32 reference of the PyTorch forward, for a sanity check."""
    h1 = jnp.maximum(x @ p["w1"] + p["b1"], 0.0)
    lat = jnp.maximum(h1 @ p["w2"] + p["b2"], 0.0)
    h2 = jnp.maximum(lat @ p["w3"] + p["b3"], 0.0)
    recon = jax.nn.sigmoid(h2 @ p["w4"] + p["b4"])
    return lat, recon


if __name__ == "__main__":
    key = jax.random.PRNGKey(0)
    kx, kp = jax.random.split(key)

    batch = 64
    input_dim = 64
    latent_dim = 32

    x = jax.random.uniform(kx, (batch, input_dim), jnp.float32)
    params = init_params(kp, input_dim, latent_dim)
    prep = jax.block_until_ready(prepare_params(params))   # one-time padding

    latent, recon = simple_autoencoder_forward(x, prep, latent_dim=latent_dim)
    jax.block_until_ready((latent, recon))

    lat_ref, rec_ref = _reference_forward(x, params)
    assert latent.shape == (batch, latent_dim)
    assert recon.shape == (batch, input_dim)
    # bf16 matmul operands + bf16 outputs -> compare to the f32 reference loosely.
    assert jnp.allclose(latent.astype(jnp.float32), lat_ref, atol=5e-2, rtol=5e-2)
    assert jnp.allclose(recon.astype(jnp.float32), rec_ref, atol=5e-2, rtol=5e-2)

    print("KERNEL_OK")
</pallas_src>

<mosaic_0001>
module attributes {stable_mosaic.version = 11 : i64} {
  func.func @_autoencoder_kernel(%arg0: i32, %arg1: memref<64x128xbf16, #tpu.memory_space<vmem>>, %arg2: memref<128x128xbf16, #tpu.memory_space<vmem>>, %arg3: memref<1x128xf32, #tpu.memory_space<vmem>>, %arg4: memref<128x128xbf16, #tpu.memory_space<vmem>>, %arg5: memref<1x128xf32, #tpu.memory_space<vmem>>, %arg6: memref<128x128xbf16, #tpu.memory_space<vmem>>, %arg7: memref<1x128xf32, #tpu.memory_space<vmem>>, %arg8: memref<128x128xbf16, #tpu.memory_space<vmem>>, %arg9: memref<1x128xf32, #tpu.memory_space<vmem>>, %arg10: memref<64x32xbf16, #tpu.memory_space<vmem>>, %arg11: memref<64x64xbf16, #tpu.memory_space<vmem>>) attributes {dimension_semantics = [#tpu.dimension_semantics<parallel>], iteration_bounds = array<i64: 1>, scalar_prefetch = 0 : i64, scratch_operands = 0 : i64, tpu.core_type = #tpu.core_type<tc>, window_params = [{transform_indices = @transform_0, window_bounds = array<i64: 64, 128>}, {pipeline_mode = #tpu.pipeline_mode<synchronous>, transform_indices = @transform_1, window_bounds = array<i64: 128, 128>}, {pipeline_mode = #tpu.pipeline_mode<synchronous>, transform_indices = @transform_2, window_bounds = array<i64: 1, 128>}, {pipeline_mode = #tpu.pipeline_mode<synchronous>, transform_indices = @transform_3, window_bounds = array<i64: 128, 128>}, {pipeline_mode = #tpu.pipeline_mode<synchronous>, transform_indices = @transform_4, window_bounds = array<i64: 1, 128>}, {pipeline_mode = #tpu.pipeline_mode<synchronous>, transform_indices = @transform_5, window_bounds = array<i64: 128, 128>}, {pipeline_mode = #tpu.pipeline_mode<synchronous>, transform_indices = @transform_6, window_bounds = array<i64: 1, 128>}, {pipeline_mode = #tpu.pipeline_mode<synchronous>, transform_indices = @transform_7, window_bounds = array<i64: 128, 128>}, {pipeline_mode = #tpu.pipeline_mode<synchronous>, transform_indices = @transform_8, window_bounds = array<i64: 1, 128>}, {transform_indices = @transform_9, window_bounds = array<i64: 64, 32>}, {transform_indices = @transform_10, window_bounds = array<i64: 64, 64>}]} {
    %c0 = arith.constant 0 : index
    %c0_0 = arith.constant 0 : index
    %0 = vector.load %arg1[%c0, %c0_0] : memref<64x128xbf16, #tpu.memory_space<vmem>>, vector<64x128xbf16>
    %c0_1 = arith.constant 0 : index
    %c0_2 = arith.constant 0 : index
    %1 = vector.load %arg2[%c0_1, %c0_2] : memref<128x128xbf16, #tpu.memory_space<vmem>>, vector<128x128xbf16>
    %cst = arith.constant dense<0.000000e+00> : vector<64x128xf32>
    %2 = tpu.matmul %0, %1, %cst {dimension_numbers = #tpu.dot_dimension_numbers<[1], [0], [0], [1], [0, 0, 1, 1], [], []>} : vector<64x128xbf16>, vector<128x128xbf16>, vector<64x128xf32> -> vector<64x128xf32>
    %c0_3 = arith.constant 0 : index
    %c0_4 = arith.constant 0 : index
    %3 = vector.load %arg3[%c0_3, %c0_4] : memref<1x128xf32, #tpu.memory_space<vmem>>, vector<1x128xf32>
    %4 = vector.broadcast %3 : vector<1x128xf32> to vector<64x128xf32>
    %5 = arith.addf %2, %4 : vector<64x128xf32>
    %cst_5 = arith.constant 0.000000e+00 : f32
    %6 = vector.broadcast %cst_5 : f32 to vector<64x128xf32>
    %7 = arith.maximumf %5, %6 : vector<64x128xf32>
    %8 = arith.truncf %7 : vector<64x128xf32> to vector<64x128xbf16>
    %c0_6 = arith.constant 0 : index
    %c0_7 = arith.constant 0 : index
    %9 = vector.load %arg4[%c0_6, %c0_7] : memref<128x128xbf16, #tpu.memory_space<vmem>>, vector<128x128xbf16>
    %cst_8 = arith.constant dense<0.000000e+00> : vector<64x128xf32>
    %10 = tpu.matmul %8, %9, %cst_8 {dimension_numbers = #tpu.dot_dimension_numbers<[1], [0], [0], [1], [0, 0, 1, 1], [], []>} : vector<64x128xbf16>, vector<128x128xbf16>, vector<64x128xf32> -> vector<64x128xf32>
    %c0_9 = arith.constant 0 : index
    %c0_10 = arith.constant 0 : index
    %11 = vector.load %arg5[%c0_9, %c0_10] : memref<1x128xf32, #tpu.memory_space<vmem>>, vector<1x128xf32>
    %12 = vector.broadcast %11 : vector<1x128xf32> to vector<64x128xf32>
    %13 = arith.addf %10, %12 : vector<64x128xf32>
    %cst_11 = arith.constant 0.000000e+00 : f32
    %14 = vector.broadcast %cst_11 : f32 to vector<64x128xf32>
    %15 = arith.maximumf %13, %14 : vector<64x128xf32>
    %16 = arith.truncf %15 : vector<64x128xf32> to vector<64x128xbf16>
    %c0_12 = arith.constant 0 : index
    %c0_13 = arith.constant 0 : index
    %17 = vector.load %arg6[%c0_12, %c0_13] : memref<128x128xbf16, #tpu.memory_space<vmem>>, vector<128x128xbf16>
    %cst_14 = arith.constant dense<0.000000e+00> : vector<64x128xf32>
    %18 = tpu.matmul %16, %17, %cst_14 {dimension_numbers = #tpu.dot_dimension_numbers<[1], [0], [0], [1], [0, 0, 1, 1], [], []>} : vector<64x128xbf16>, vector<128x128xbf16>, vector<64x128xf32> -> vector<64x128xf32>
    %c0_15 = arith.constant 0 : index
    %c0_16 = arith.constant 0 : index
    %19 = vector.load %arg7[%c0_15, %c0_16] : memref<1x128xf32, #tpu.memory_space<vmem>>, vector<1x128xf32>
    %20 = vector.broadcast %19 : vector<1x128xf32> to vector<64x128xf32>
    %21 = arith.addf %18, %20 : vector<64x128xf32>
    %cst_17 = arith.constant 0.000000e+00 : f32
    %22 = vector.broadcast %cst_17 : f32 to vector<64x128xf32>
    %23 = arith.maximumf %21, %22 : vector<64x128xf32>
    %24 = arith.truncf %23 : vector<64x128xf32> to vector<64x128xbf16>
    %c0_18 = arith.constant 0 : index
    %c0_19 = arith.constant 0 : index
    %25 = vector.load %arg8[%c0_18, %c0_19] : memref<128x128xbf16, #tpu.memory_space<vmem>>, vector<128x128xbf16>
    %cst_20 = arith.constant dense<0.000000e+00> : vector<64x128xf32>
    %26 = tpu.matmul %24, %25, %cst_20 {dimension_numbers = #tpu.dot_dimension_numbers<[1], [0], [0], [1], [0, 0, 1, 1], [], []>} : vector<64x128xbf16>, vector<128x128xbf16>, vector<64x128xf32> -> vector<64x128xf32>
    %c0_21 = arith.constant 0 : index
    %c0_22 = arith.constant 0 : index
    %27 = vector.load %arg9[%c0_21, %c0_22] : memref<1x128xf32, #tpu.memory_space<vmem>>, vector<1x128xf32>
    %28 = vector.broadcast %27 : vector<1x128xf32> to vector<64x128xf32>
    %29 = arith.addf %26, %28 : vector<64x128xf32>
    %cst_23 = arith.constant 5.000000e-01 : f32
    %30 = vector.broadcast %cst_23 : f32 to vector<64x128xf32>
    %31 = arith.mulf %30, %29 : vector<64x128xf32>
    %32 = math.tanh %31 : vector<64x128xf32>
    %cst_24 = arith.constant 5.000000e-01 : f32
    %33 = vector.broadcast %cst_24 : f32 to vector<64x128xf32>
    %34 = arith.mulf %33, %32 : vector<64x128xf32>
    %cst_25 = arith.constant 5.000000e-01 : f32
    %35 = vector.broadcast %cst_25 : f32 to vector<64x128xf32>
    %36 = arith.addf %34, %35 : vector<64x128xf32>
    %37 = vector.extract_strided_slice %15 {offsets = [0, 0], sizes = [64, 32], strides = [1, 1]} : vector<64x128xf32> to vector<64x32xf32>
    %38 = arith.truncf %37 : vector<64x32xf32> to vector<64x32xbf16>
    %c0_26 = arith.constant 0 : index
    %c0_27 = arith.constant 0 : index
    %39 = vector.load %arg10[%c0_26, %c0_27] : memref<64x32xbf16, #tpu.memory_space<vmem>>, vector<64x32xbf16>
    tpu.vector_store %arg10[%c0_26, %c0_27], %38 {strides = array<i32>} : memref<64x32xbf16, #tpu.memory_space<vmem>>, vector<64x32xbf16>,
    %40 = vector.extract_strided_slice %36 {offsets = [0, 0], sizes = [64, 64], strides = [1, 1]} : vector<64x128xf32> to vector<64x64xf32>
    %41 = arith.truncf %40 : vector<64x64xf32> to vector<64x64xbf16>
    %c0_28 = arith.constant 0 : index
    %c0_29 = arith.constant 0 : index
    %42 = vector.load %arg11[%c0_28, %c0_29] : memref<64x64xbf16, #tpu.memory_space<vmem>>, vector<64x64xbf16>
    tpu.vector_store %arg11[%c0_28, %c0_29], %41 {strides = array<i32>} : memref<64x64xbf16, #tpu.memory_space<vmem>>, vector<64x64xbf16>,
    return
  }
  func.func @transform_0(%arg0: i32) -> (i32, i32) {
    %c0_i32 = arith.constant 0 : i32
    %c0_i32_0 = arith.constant 0 : i32
    return %arg0, %c0_i32 : i32, i32
  }
  func.func @transform_1(%arg0: i32) -> (i32, i32) {
    %c0_i32 = arith.constant 0 : i32
    %c0_i32_0 = arith.constant 0 : i32
    %c0_i32_1 = arith.constant 0 : i32
    return %c0_i32, %c0_i32_0 : i32, i32
  }
  func.func @transform_2(%arg0: i32) -> (i32, i32) {
    %c0_i32 = arith.constant 0 : i32
    %c0_i32_0 = arith.constant 0 : i32
    %c0_i32_1 = arith.constant 0 : i32
    return %c0_i32, %c0_i32_0 : i32, i32
  }
  func.func @transform_3(%arg0: i32) -> (i32, i32) {
    %c0_i32 = arith.constant 0 : i32
    %c0_i32_0 = arith.constant 0 : i32
    %c0_i32_1 = arith.constant 0 : i32
    return %c0_i32, %c0_i32_0 : i32, i32
  }
  func.func @transform_4(%arg0: i32) -> (i32, i32) {
    %c0_i32 = arith.constant 0 : i32
    %c0_i32_0 = arith.constant 0 : i32
    %c0_i32_1 = arith.constant 0 : i32
    return %c0_i32, %c0_i32_0 : i32, i32
  }
  func.func @transform_5(%arg0: i32) -> (i32, i32) {
    %c0_i32 = arith.constant 0 : i32
    %c0_i32_0 = arith.constant 0 : i32
    %c0_i32_1 = arith.constant 0 : i32
    return %c0_i32, %c0_i32_0 : i32, i32
  }
  func.func @transform_6(%arg0: i32) -> (i32, i32) {
    %c0_i32 = arith.constant 0 : i32
    %c0_i32_0 = arith.constant 0 : i32
    %c0_i32_1 = arith.constant 0 : i32
    return %c0_i32, %c0_i32_0 : i32, i32
  }
  func.func @transform_7(%arg0: i32) -> (i32, i32) {
    %c0_i32 = arith.constant 0 : i32
    %c0_i32_0 = arith.constant 0 : i32
    %c0_i32_1 = arith.constant 0 : i32
    return %c0_i32, %c0_i32_0 : i32, i32
  }
  func.func @transform_8(%arg0: i32) -> (i32, i32) {
    %c0_i32 = arith.constant 0 : i32
    %c0_i32_0 = arith.constant 0 : i32
    %c0_i32_1 = arith.constant 0 : i32
    return %c0_i32, %c0_i32_0 : i32, i32
  }
  func.func @transform_9(%arg0: i32) -> (i32, i32) {
    %c0_i32 = arith.constant 0 : i32
    %c0_i32_0 = arith.constant 0 : i32
    return %arg0, %c0_i32 : i32, i32
  }
  func.func @transform_10(%arg0: i32) -> (i32, i32) {
    %c0_i32 = arith.constant 0 : i32
    %c0_i32_0 = arith.constant 0 : i32
    return %arg0, %c0_i32 : i32, i32
  }
}

</mosaic_0001>

<bundles_post_ra>
// kernel: simple_autoencoder_forward.1
= control target key start
LH: loop header
LB: loop body
LE: loop exit
PB: predicated region body
PF: predicated region fallthrough
CT: control target
= control target key end

     0   :  { %16 = vsyncpa [#allocation3], 0  ;;  %s1370_s0 = inlined_call_operand.vmem [shape: bf16[64,128], index: 0, kind: input, shape index: {}]   ;;  %s1371_s1 = inlined_call_operand.vmem [shape: bf16[128,128], index: 1, kind: input, shape index: {}]   ;;  %s1372_s2 = inlined_call_operand.vmem [shape: f32[1,128], index: 2, kind: input, shape index: {}]   ;;  %s1373_s3 = inlined_call_operand.vmem [shape: bf16[128,128], index: 3, kind: input, shape index: {}]   ;;  %s1374_s4 = inlined_call_operand.vmem [shape: f32[1,128], index: 4, kind: input, shape index: {}]   ;;  %s1375_s5 = inlined_call_operand.hbm [shape: bf16[128,128], index: 5, kind: input, shape index: {}]   ;;  %s1376_s6 = inlined_call_operand.vmem [shape: f32[1,128], index: 6, kind: input, shape index: {}]   ;;  %s1377_s7 = inlined_call_operand.hbm [shape: bf16[128,128], index: 7, kind: input, shape index: {}]   ;;  %s1378_s8 = inlined_call_operand.vmem [shape: f32[1,128], index: 8, kind: input, shape index: {}]   ;;  %s1379_s9 = inlined_call_operand.vmem [shape: bf16[64,32], index: 9, kind: output, shape index: {0}]   ;;  %s1380_s10 = inlined_call_operand.hbm [shape: bf16[64,64], index: 10, kind: output, shape index: {1}]  }
   0x1   :  { %17 = vsyncpa [#allocation6], 0 }
   0x2   :  { %18 = vsyncpa [#allocation4], 0  ;;  %s1153_s13 = smov [#allocation2]   ;;  %s1081_s17 = scalar_lea.hbm %s1375_s5, 1024 }
   0x3   :  { %s34_s14 = sshll.u32 %s1153_s13, 4  ;;  %p1082_p0 = scmp.ne.s32.totalorder %s1375_s5, %s1081_s17  ;;  %s35_s14 = int_to_ptr.vmem [resolvable:$true] %s34_s14 }
   0x4   :  { %p1085_p1 = scmp.lt.u32.totalorder %s1081_s17, %s1375_s5 }
   0x6   :  { %p1087_p2 = pnand %p1085_p1, %p1082_p0 }
   0x8   :  { %1090 = shalt.err (!%p1087_p2)
}
   0x9   :  { %s1091_s22 = scalar_lea.vmem %s35_s14, 1024  ;;  %p1096_p4 = scmp.lt.s32.totalorder %s35_s14, %s35_s14 }
   0xa   :  { %p1092_p3 = scmp.ne.s32.totalorder %s35_s14, %s1091_s22  ;;  %p1097_p5 = scmp.lt.s32.totalorder %s1091_s22, %s1091_s22 }
   0xc   :  { %p1098_p6 = por %p1097_p5, %p1096_p4 }
   0xe   :  { %p1099_p7 = pnand %p1098_p6, %p1092_p3 }
  0x10   :  { %1102 = shalt.err (!%p1099_p7)
}
  0x11   :  { %s1154_s23 = smov 64   ;;  %s1155_s24 = smov 4  }
  0x12   :  { %40 = dma.hbm_to_vmem [thread:$0]  %s1375_s5, 1024, %s35_s14, [#allocation3], %s1154_s23, %s1154_s23, %s1155_s24  }
  0x13   :  { %s1156_s27 = smov [#allocation5]   ;;  %s1103_s11 = scalar_lea.hbm %s1377_s7, 1024 }
  0x14   :  { %s48_s28 = sshll.u32 %s1156_s27, 4  ;;  %p1104_p8 = scmp.ne.s32.totalorder %s1377_s7, %s1103_s11  ;;  %s49_s28 = int_to_ptr.vmem [resolvable:$true] %s48_s28 }
  0x15   :  { %p1107_p9 = scmp.lt.u32.totalorder %s1103_s11, %s1377_s7 }
  0x17   :  { %p1109_p10 = pnand %p1107_p9, %p1104_p8 }
  0x19   :  { %1112 = shalt.err (!%p1109_p10)
}
  0x1a   :  { %s1113_s17 = scalar_lea.vmem %s49_s28, 1024  ;;  %p1118_p12 = scmp.lt.s32.totalorder %s49_s28, %s49_s28 }
  0x1b   :  { %p1114_p11 = scmp.ne.s32.totalorder %s49_s28, %s1113_s17  ;;  %p1119_p13 = scmp.lt.s32.totalorder %s1113_s17, %s1113_s17 }
  0x1d   :  { %p1120_p0 = por %p1119_p13, %p1118_p12 }
  0x1f   :  { %p1121_p1 = pnand %p1120_p0, %p1114_p11 }
  0x21   :  { %1124 = shalt.err (!%p1121_p1)
}
  0x22   :  { %54 = dma.hbm_to_vmem [thread:$0]  %s1377_s7, 1024, %s49_s28, [#allocation6], %s1154_s23, %s1154_s23, %s1155_s24  }
  0x23   :  { %1147 = dma.done.wait [#allocation3], 1024  }
  0x24   :  { %1148 = vsyncadd [#allocation3], 4294966272 }
  0x25   :  { %1149 = dma.done.wait [#allocation6], 1024  }
  0x26   :  { %1150 = vsyncadd [#allocation6], 4294966272  ;;  %v1029_v0 = vld [vmem:[%s1371_s1] sm:$0xff]   ;;  %v1030_v1 = vld [vmem:[%s1371_s1 + $0x8] sm:$0xff]   ;;  %vm736_vm0 = vcmask 257024   ;;  %vm777_vm1 = vcmask 519168  }
  0x27   :  { %928 = vmatprep.subr.bf16.mxu0 %v1029_v0  ;;  %v1031_v2 = vld [vmem:[%s1371_s1 + $0x10] sm:$0xff]   ;;  %v1032_v3 = vld [vmem:[%s1371_s1 + $0x18] sm:$0xff]   ;;  %v1037_v4 = vld [vmem:[%s1370_s0] sm:$0xff]  }
  0x28   :  { %929 = vmatpush3.bf16.msra.mxu0 %v1029_v0  ;;  %944 = vmatprep.mubr.bf16.mxu0 %v1037_v4  ;;  %v1033_v5 = vld [vmem:[%s1371_s1 + $0x20] sm:$0xff]   ;;  %v1042_v7 = vld [vmem:[%s1373_s3 + $0x8] sm:$0xff]   ;;  %v1043_v9 = vld [vmem:[%s1373_s3 + $0x10] sm:$0xff]  }
  0x29   :  { %930 = vmatprep.subr.bf16.mxu0 %v1030_v1  ;;  %v1041_v6 = vld [vmem:[%s1373_s3] sm:$0xff]   ;;  %v1034_v8 = vld [vmem:[%s1371_s1 + $0x28] sm:$0xff]   ;;  %v1035_v10 = vld [vmem:[%s1371_s1 + $0x30] sm:$0xff]  }
  0x2a   :  { %952 = vmatprep.subr.bf16.mxu1 %v1041_v6  ;;  %v1044_v11 = vld [vmem:[%s1373_s3 + $0x18] sm:$0xff]   ;;  %v1045_v13 = vld [vmem:[%s1373_s3 + $0x20] sm:$0xff]   ;;  %v1046_v14 = vld [vmem:[%s1373_s3 + $0x28] sm:$0xff]  }
  0x2b   :  { %953 = vmatpush3.bf16.msra.mxu1 %v1041_v6  ;;  %v1036_v12 = vld [vmem:[%s1371_s1 + $0x38] sm:$0xff]   ;;  %v1038_v15 = vld [vmem:[%s1370_s0 + $0x8] sm:$0xff]   ;;  %v1039_v16 = vld [vmem:[%s1370_s0 + $0x10] sm:$0xff]  }
  0x2c   :  { %931 = vmatpush3.bf16.msra.mxu0 %v1030_v1  ;;  %954 = vmatprep.subr.bf16.mxu1 %v1042_v7  ;;  %v1040_v17 = vld [vmem:[%s1370_s0 + $0x18] sm:$0xff]   ;;  %v1047_v18 = vld [vmem:[%s1373_s3 + $0x30] sm:$0xff]   ;;  %v1049_v20 = vld [vmem:[#allocation2] sm:$0xff]  }
  0x2d   :  { %932 = vmatprep.subr.bf16.mxu0 %v1031_v2  ;;  %v1048_v19 = vld [vmem:[%s1373_s3 + $0x38] sm:$0xff]   ;;  %v1050_v21 = vld [vmem:[#allocation2 + $0x8] sm:$0xff]   ;;  %v1051_v22 = vld [vmem:[#allocation2 + $0x10] sm:$0xff]  }
  0x2e   :  { %v1052_v23 = vld [vmem:[#allocation2 + $0x18] sm:$0xff]   ;;  %v1053_v24 = vld [vmem:[#allocation2 + $0x20] sm:$0xff]   ;;  %v1054_v25 = vld [vmem:[#allocation2 + $0x28] sm:$0xff]  }
  0x2f   :  { %955 = vmatpush3.bf16.msra.mxu1 %v1042_v7  ;;  %v808_v26 = vld [vmem:[%s1372_s2] ss:$0 sm:$0xff]  ;;  %v1055_v55 = vld [vmem:[#allocation2 + $0x30] sm:$0xff]   ;;  %v1056_v56 = vld [vmem:[#allocation2 + $0x38] sm:$0xff]  }
  0x30   :  { %933 = vmatpush3.bf16.msra.mxu0 %v1031_v2  ;;  %956 = vmatprep.subr.bf16.mxu1 %v1043_v9  ;;  %v1057_v57 = vld [vmem:[#allocation5] sm:$0xff]   ;;  %v1058_v58 = vld [vmem:[#allocation5 + $0x8] sm:$0xff]   ;;  %v1059_v59 = vld [vmem:[#allocation5 + $0x10] sm:$0xff]  }
  0x31   :  { %934 = vmatprep.subr.bf16.mxu0 %v1032_v3  ;;  %v1060_v60 = vld [vmem:[#allocation5 + $0x18] sm:$0xff]   ;;  %v1061_v61 = vld [vmem:[#allocation5 + $0x20] sm:$0xff]   ;;  %v1062_v62 = vld [vmem:[#allocation5 + $0x28] sm:$0xff]  }
  0x32   :  { %v821_v63 = vld [vmem:[%s1374_s4] ss:$0 sm:$0xff] }
  0x33   :  { %957 = vmatpush3.bf16.msra.mxu1 %v1043_v9 }
  0x34   :  { %935 = vmatpush3.bf16.msra.mxu0 %v1032_v3  ;;  %958 = vmatprep.subr.bf16.mxu1 %v1044_v11 }
  0x35   :  { %936 = vmatprep.subr.bf16.mxu0 %v1033_v5 }
  0x37   :  { %959 = vmatpush3.bf16.msra.mxu1 %v1044_v11 }
  0x38   :  { %937 = vmatpush3.bf16.msra.mxu0 %v1033_v5  ;;  %960 = vmatprep.subr.bf16.mxu1 %v1045_v13 }
  0x39   :  { %938 = vmatprep.subr.bf16.mxu0 %v1034_v8 }
  0x3b   :  { %961 = vmatpush3.bf16.msra.mxu1 %v1045_v13 }
  0x3c   :  { %939 = vmatpush3.bf16.msra.mxu0 %v1034_v8  ;;  %962 = vmatprep.subr.bf16.mxu1 %v1046_v14 }
  0x3d   :  { %940 = vmatprep.subr.bf16.mxu0 %v1035_v10 }
  0x3f   :  { %963 = vmatpush3.bf16.msra.mxu1 %v1046_v14 }
  0x40   :  { %941 = vmatpush3.bf16.msra.mxu0 %v1035_v10  ;;  %964 = vmatprep.subr.bf16.mxu1 %v1047_v18 }
  0x41   :  { %942 = vmatprep.subr.bf16.mxu0 %v1036_v12 }
  0x43   :  { %965 = vmatpush3.bf16.msra.mxu1 %v1047_v18 }
  0x44   :  { %943 = vmatpush3.bf16.msra.mxu0 %v1036_v12  ;;  %966 = vmatprep.subr.bf16.mxu1 %v1048_v19 }
  0x45   :  { %976 = vmatprep.subr.bf16.mxu0 %v1049_v20 }
  0x47   :  { %945 = vmatmul.mubr.bf16.vlgmr.msra.gmra.mrb[0].mxu0 %v1038_v15  ;;  %967 = vmatpush3.bf16.msra.mxu1 %v1048_v19 }
  0x48   :  { %948 = vmatprep.mubr.bf16.mxu0 %v1039_v16  ;;  %977 = vmatpush3.bf16.msra.mxu0 %v1049_v20 }
  0x49   :  { %978 = vmatprep.subr.bf16.mxu0 %v1050_v21  ;;  %1000 = vmatprep.subr.bf16.mxu1 %v1057_v57 }
  0x4c   :  { %979 = vmatpush3.bf16.msra.mxu0 %v1050_v21 }
  0x4d   :  { %980 = vmatprep.subr.bf16.mxu0 %v1051_v22 }
  0x4f   :  { %949 = vmatmul.mubr.bf16.gmra.mrb[4].mxu0 %v1040_v17 }
  0x50   :  { %981 = vmatpush3.bf16.msra.mxu0 %v1051_v22 }
  0x51   :  { %982 = vmatprep.subr.bf16.mxu0 %v1052_v23 }
  0x54   :  { %983 = vmatpush3.bf16.msra.mxu0 %v1052_v23 }
  0x55   :  { %984 = vmatprep.subr.bf16.mxu0 %v1053_v24 }
  0x58   :  { %985 = vmatpush3.bf16.msra.mxu0 %v1053_v24 }
  0x59   :  { %986 = vmatprep.subr.bf16.mxu0 %v1054_v25 }
  0x5c   :  { %987 = vmatpush3.bf16.msra.mxu0 %v1054_v25 }
  0x5d   :  { %988 = vmatprep.subr.bf16.mxu0 %v1055_v55 }
  0x60   :  { %989 = vmatpush3.bf16.msra.mxu0 %v1055_v55 }
  0x61   :  { %990 = vmatprep.subr.bf16.mxu0 %v1056_v56 }
  0x64   :  { %991 = vmatpush3.bf16.msra.mxu0 %v1056_v56 }
 0x11a   :  { %v946_v27 = vpop.f32.mrb[0].mxu0 }
 0x11b   :  { %v210_v28 = vadd.f32 %v946_v27, %v808_v26  ;;  %v201_v29 = vpop.f32.mrb[1].mxu0 }
 0x11c   :  { %v202_v30 = vadd.f32 %v808_v26, %v201_v29  ;;  %v947_v31 = vpop.f32.mrb[2].mxu0 }
 0x11d   :  { %v213_v32 = vadd.f32 %v947_v31, %v808_v26  ;;  %v204_v33 = vpop.f32.mrb[3].mxu0  ;;  %v234_v35 = vmax.f32 %v210_v28, 0.0 }
 0x11e   :  { %v205_v34 = vadd.f32 %v808_v26, %v204_v33  ;;  %v232_v37 = vmax.f32 %v202_v30, 0.0 }
 0x11f   :  { %v235_v36 = vmax.f32 %v213_v32, 0.0 }
 0x120   :  { %v233_v38 = vmax.f32 %v205_v34, 0.0 }
 0x121   :  { %v241_v39 = vpack.c.bf16 %v235_v36, %v234_v35  ;;  %v1063_v36 = vld [vmem:[#allocation5 + $0x30] sm:$0xff]  }
 0x122   :  { %v950_v40 = vpop.f32.mrb[4].mxu0  ;;  %v240_v41 = vpack.c.bf16 %v233_v38, %v232_v37  ;;  %v1064_v37 = vld [vmem:[#allocation5 + $0x38] sm:$0xff]   ;;  %v830_v38 = vld [vmem:[%s1376_s6] ss:$0 sm:$0xff] }
 0x123   :  { %v226_v42 = vadd.f32 %v950_v40, %v808_v26  ;;  %v217_v43 = vpop.f32.mrb[5].mxu0 }
 0x124   :  { %v218_v44 = vadd.f32 %v808_v26, %v217_v43  ;;  %v951_v45 = vpop.f32.mrb[6].mxu0  ;;  %968 = vmatprep.mubr.bf16.mxu1 %v240_v41 }
 0x125   :  { %v229_v46 = vadd.f32 %v951_v45, %v808_v26  ;;  %v220_v47 = vpop.f32.mrb[7].mxu0  ;;  %969 = vmatmul.mubr.bf16.vlgmr.msra.gmra.mrb[0].mxu1 %v241_v39  ;;  %v238_v49 = vmax.f32 %v226_v42, 0.0 }
 0x126   :  { %v221_v48 = vadd.f32 %v808_v26, %v220_v47  ;;  %v236_v51 = vmax.f32 %v218_v44, 0.0  ;;  %1001 = vmatpush3.bf16.msra.mxu1 %v1057_v57 }
 0x127   :  { %v239_v50 = vmax.f32 %v229_v46, 0.0  ;;  %1002 = vmatprep.subr.bf16.mxu1 %v1058_v58 }
 0x128   :  { %v237_v52 = vmax.f32 %v221_v48, 0.0 }
 0x129   :  { %v243_v53 = vpack.c.bf16 %v239_v50, %v238_v49 }
 0x12a   :  { %v242_v54 = vpack.c.bf16 %v237_v52, %v236_v51  ;;  %1003 = vmatpush3.bf16.msra.mxu1 %v1058_v58 }
 0x12b   :  { %1004 = vmatprep.subr.bf16.mxu1 %v1059_v59 }
 0x12c   :  { %972 = vmatprep.mubr.bf16.mxu1 %v242_v54 }
 0x12d   :  { %973 = vmatmul.mubr.bf16.gmra.mrb[4].mxu1 %v243_v53 }
 0x12e   :  { %1005 = vmatpush3.bf16.msra.mxu1 %v1059_v59 }
 0x12f   :  { %1006 = vmatprep.subr.bf16.mxu1 %v1060_v60 }
 0x132   :  { %1007 = vmatpush3.bf16.msra.mxu1 %v1060_v60 }
 0x133   :  { %1008 = vmatprep.subr.bf16.mxu1 %v1061_v61 }
 0x136   :  { %1009 = vmatpush3.bf16.msra.mxu1 %v1061_v61 }
 0x137   :  { %1010 = vmatprep.subr.bf16.mxu1 %v1062_v62 }
 0x13a   :  { %1011 = vmatpush3.bf16.msra.mxu1 %v1062_v62 }
 0x13b   :  { %1012 = vmatprep.subr.bf16.mxu1 %v1063_v36 }
 0x13e   :  { %1013 = vmatpush3.bf16.msra.mxu1 %v1063_v36 }
 0x13f   :  { %1014 = vmatprep.subr.bf16.mxu1 %v1064_v37 }
 0x142   :  { %1015 = vmatpush3.bf16.msra.mxu1 %v1064_v37 }
 0x1f8   :  { %v970_v0 = vpop.f32.mrb[0].mxu1 }
 0x1f9   :  { %v358_v1 = vadd.f32 %v970_v0, %v821_v63  ;;  %v349_v2 = vpop.f32.mrb[1].mxu1 }
 0x1fa   :  { %v350_v3 = vadd.f32 %v821_v63, %v349_v2  ;;  %v971_v4 = vpop.f32.mrb[2].mxu1 }
 0x1fb   :  { %v382_v5 = vmax.f32 %v358_v1, 0.0  ;;  %v361_v6 = vadd.f32 %v971_v4, %v821_v63  ;;  %v352_v7 = vpop.f32.mrb[3].mxu1 }
 0x1fc   :  { %v380_v8 = vmax.f32 %v350_v3, 0.0  ;;  %v353_v9 = vadd.f32 %v821_v63, %v352_v7  ;;  %v839_v3 = vld [vmem:[%s1378_s8] ss:$0 sm:$0xff]  ;;  %s1157_s8 = smov [#allocation7]  }
 0x1fd   :  { %v866_v10 = vpack.c.bf16 %v382_v5, %v382_v5  ;;  %v383_v11 = vmax.f32 %v361_v6, 0.0  ;;  %s793_s16 = sshll.u32 %s1157_s8, 4  ;;  %s794_s16 = int_to_ptr.vmem [resolvable:$true] %s793_s16 }
 0x1fe   :  { %v864_v12 = vpack.c.bf16 %v380_v8, %v380_v8  ;;  %v381_v13 = vmax.f32 %v353_v9, 0.0  ;;  %s1125_s17 = scalar_lea.vmem %s794_s16, 512  ;;  %p1130_p3 = scmp.lt.s32.totalorder %s794_s16, %s794_s16 }
 0x1ff   :  { %739 = vst.msk [vmem:[%s1379_s9 + $0x8] sm:$0xf] %vm736_vm0, %v866_v10  ;;  %v389_v14 = vpack.c.bf16 %v383_v11, %v382_v5  ;;  %v867_v15 = vpack.c.bf16 %v383_v11, %v383_v11  ;;  %p1126_p2 = scmp.ne.s32.totalorder %s794_s16, %s1125_s17  ;;  %p1131_p4 = scmp.lt.s32.totalorder %s1125_s17, %s1125_s17 }
 0x200   :  { %737 = vst.msk [vmem:[%s1379_s9] sm:$0xf] %vm736_vm0, %v864_v12  ;;  %v388_v16 = vpack.c.bf16 %v381_v13, %v380_v8  ;;  %v865_v17 = vpack.c.bf16 %v381_v13, %v381_v13  ;;  %v974_v18 = vpop.f32.mrb[4].mxu1 }
 0x201   :  { %740 = vst.msk [vmem:[%s1379_s9 + $0xc] sm:$0xf] %vm736_vm0, %v867_v15  ;;  %v374_v19 = vadd.f32 %v974_v18, %v821_v63  ;;  %v365_v20 = vpop.f32.mrb[5].mxu1  ;;  %p1132_p5 = por %p1131_p4, %p1130_p3 }
 0x202   :  { %738 = vst.msk [vmem:[%s1379_s9 + $0x4] sm:$0xf] %vm736_vm0, %v865_v17  ;;  %v366_v21 = vadd.f32 %v821_v63, %v365_v20  ;;  %v975_v22 = vpop.f32.mrb[6].mxu1  ;;  %992 = vmatprep.mubr.bf16.mxu0 %v388_v16 }
 0x203   :  { %v386_v23 = vmax.f32 %v374_v19, 0.0  ;;  %v377_v24 = vadd.f32 %v975_v22, %v821_v63  ;;  %v368_v25 = vpop.f32.mrb[7].mxu1  ;;  %993 = vmatmul.mubr.bf16.vlgmr.msra.gmra.mrb[8].mxu0 %v389_v14  ;;  %p1133_p6 = pnand %p1132_p5, %p1126_p2 }
 0x204   :  { %v384_v26 = vmax.f32 %v366_v21, 0.0  ;;  %v369_v27 = vadd.f32 %v821_v63, %v368_v25 }
 0x205   :  { %v870_v28 = vpack.c.bf16 %v386_v23, %v386_v23  ;;  %v387_v29 = vmax.f32 %v377_v24, 0.0 }
 0x206   :  { %v868_v30 = vpack.c.bf16 %v384_v26, %v384_v26  ;;  %v385_v31 = vmax.f32 %v369_v27, 0.0 }
 0x207   :  { %743 = vst.msk [vmem:[%s1379_s9 + $0x18] sm:$0xf] %vm736_vm0, %v870_v28  ;;  %v391_v32 = vpack.c.bf16 %v387_v29, %v386_v23  ;;  %v871_v33 = vpack.c.bf16 %v387_v29, %v387_v29 }
 0x208   :  { %741 = vst.msk [vmem:[%s1379_s9 + $0x10] sm:$0xf] %vm736_vm0, %v868_v30  ;;  %v390_v34 = vpack.c.bf16 %v385_v31, %v384_v26  ;;  %v869_v35 = vpack.c.bf16 %v385_v31, %v385_v31 }
 0x209   :  { %744 = vst.msk [vmem:[%s1379_s9 + $0x1c] sm:$0xf] %vm736_vm0, %v871_v33 }
 0x20a   :  { %742 = vst.msk [vmem:[%s1379_s9 + $0x14] sm:$0xf] %vm736_vm0, %v869_v35  ;;  %996 = vmatprep.mubr.bf16.mxu0 %v390_v34 }
 0x20b   :  { %997 = vmatmul.mubr.bf16.gmra.mrb[12].mxu0 %v391_v32 }
 0x2d6   :  { %v994_v39 = vpop.f32.mrb[8].mxu0 }
 0x2d7   :  { %v506_v40 = vadd.f32 %v994_v39, %v830_v38  ;;  %v497_v41 = vpop.f32.mrb[9].mxu0 }
 0x2d8   :  { %v498_v42 = vadd.f32 %v830_v38, %v497_v41  ;;  %v995_v43 = vpop.f32.mrb[10].mxu0 }
 0x2d9   :  { %v509_v44 = vadd.f32 %v995_v43, %v830_v38  ;;  %v500_v45 = vpop.f32.mrb[11].mxu0  ;;  %v530_v47 = vmax.f32 %v506_v40, 0.0 }
 0x2da   :  { %v501_v46 = vadd.f32 %v830_v38, %v500_v45  ;;  %v528_v49 = vmax.f32 %v498_v42, 0.0 }
 0x2db   :  { %v531_v48 = vmax.f32 %v509_v44, 0.0 }
 0x2dc   :  { %v529_v50 = vmax.f32 %v501_v46, 0.0 }
 0x2dd   :  { %v537_v51 = vpack.c.bf16 %v531_v48, %v530_v47 }
 0x2de   :  { %v536_v52 = vpack.c.bf16 %v529_v50, %v528_v49  ;;  %v998_v53 = vpop.f32.mrb[12].mxu0 }
 0x2df   :  { %v522_v54 = vadd.f32 %v998_v53, %v830_v38  ;;  %v513_v55 = vpop.f32.mrb[13].mxu0 }
 0x2e0   :  { %v514_v56 = vadd.f32 %v830_v38, %v513_v55  ;;  %v999_v57 = vpop.f32.mrb[14].mxu0  ;;  %1016 = vmatprep.mubr.bf16.mxu1 %v536_v52 }
 0x2e1   :  { %v525_v58 = vadd.f32 %v999_v57, %v830_v38  ;;  %v516_v59 = vpop.f32.mrb[15].mxu0  ;;  %1017 = vmatmul.mubr.bf16.vlgmr.msra.gmra.mrb[8].mxu1 %v537_v51  ;;  %v534_v61 = vmax.f32 %v522_v54, 0.0 }
 0x2e2   :  { %v517_v60 = vadd.f32 %v830_v38, %v516_v59  ;;  %v532_v63 = vmax.f32 %v514_v56, 0.0 }
 0x2e3   :  { %v535_v62 = vmax.f32 %v525_v58, 0.0 }
 0x2e4   :  { %v533_v0 = vmax.f32 %v517_v60, 0.0 }
 0x2e5   :  { %v539_v1 = vpack.c.bf16 %v535_v62, %v534_v61 }
 0x2e6   :  { %v538_v2 = vpack.c.bf16 %v533_v0, %v532_v63 }
 0x2e8   :  { %1020 = vmatprep.mubr.bf16.mxu1 %v538_v2 }
 0x2e9   :  { %1021 = vmatmul.mubr.bf16.gmra.mrb[12].mxu1 %v539_v1 }
 0x3b4   :  { %v1018_v4 = vpop.f32.mrb[8].mxu1 }
 0x3b5   :  { %v654_v5 = vadd.f32 %v1018_v4, %v839_v3  ;;  %v645_v6 = vpop.f32.mrb[9].mxu1 }
 0x3b6   :  { %v646_v7 = vadd.f32 %v839_v3, %v645_v6  ;;  %v1019_v8 = vpop.f32.mrb[10].mxu1 }
 0x3b7   :  { %v678_v9 = vmul.f32 0.5, %v654_v5  ;;  %v657_v10 = vadd.f32 %v1019_v8, %v839_v3  ;;  %v648_v11 = vpop.f32.mrb[11].mxu1 }
 0x3b8   :  { %v676_v12 = vmul.f32 0.5, %v646_v7  ;;  %v649_v13 = vadd.f32 %v839_v3, %v648_v11 }
 0x3b9   :  { %1065 = vtanh.f32 %v678_v9  ;;  %v679_v14 = vmul.f32 0.5, %v657_v10 }
 0x3ba   :  { %1067 = vtanh.f32 %v676_v12  ;;  %v677_v15 = vmul.f32 0.5, %v649_v13 }
 0x3bb   :  { %1069 = vtanh.f32 %v679_v14 }
 0x3bc   :  { %1071 = vtanh.f32 %v677_v15  ;;  %v1022_v16 = vpop.f32.mrb[12].mxu1 }
 0x3bd   :  { %v670_v17 = vadd.f32 %v1022_v16, %v839_v3  ;;  %v661_v18 = vpop.f32.mrb[13].mxu1 }
 0x3be   :  { %v662_v19 = vadd.f32 %v839_v3, %v661_v18  ;;  %v1023_v20 = vpop.f32.mrb[14].mxu1 }
 0x3bf   :  { %v682_v21 = vmul.f32 0.5, %v670_v17  ;;  %v673_v22 = vadd.f32 %v1023_v20, %v839_v3  ;;  %v664_v23 = vpop.f32.mrb[15].mxu1 }
 0x3c0   :  { %v680_v24 = vmul.f32 0.5, %v662_v19  ;;  %v665_v25 = vadd.f32 %v839_v3, %v664_v23 }
 0x3c1   :  { %1073 = vtanh.f32 %v682_v21  ;;  %v683_v26 = vmul.f32 0.5, %v673_v22 }
 0x3c2   :  { %1075 = vtanh.f32 %v680_v24  ;;  %v681_v27 = vmul.f32 0.5, %v665_v25 }
 0x3c3   :  { %v1066_v28 = vpop.eup %1065  ;;  %1077 = vtanh.f32 %v683_v26 }
 0x3c4   :  { %v1068_v29 = vpop.eup %1067  ;;  %v694_v30 = vmul.f32 0.5, %v1066_v28  ;;  %1079 = vtanh.f32 %v681_v27 }
 0x3c5   :  { %v1070_v31 = vpop.eup %1069  ;;  %v692_v32 = vmul.f32 0.5, %v1068_v29 }
 0x3c6   :  { %v1072_v33 = vpop.eup %1071  ;;  %v702_v34 = vadd.f32 0.5, %v694_v30  ;;  %v695_v35 = vmul.f32 0.5, %v1070_v31 }
 0x3c7   :  { %v700_v36 = vadd.f32 0.5, %v692_v32  ;;  %v693_v37 = vmul.f32 0.5, %v1072_v33 }
 0x3c8   :  { %v874_v38 = vpack.c.bf16 %v702_v34, %v702_v34  ;;  %v703_v39 = vadd.f32 0.5, %v695_v35 }
 0x3c9   :  { %v872_v40 = vpack.c.bf16 %v700_v36, %v700_v36  ;;  %v701_v41 = vadd.f32 0.5, %v693_v37 }
 0x3ca   :  { %780 = vst.msk [vmem:[#allocation7 + $0x8] sm:$0xf] %vm777_vm1, %v874_v38  ;;  %v875_v42 = vpack.c.bf16 %v703_v39, %v703_v39 }
 0x3cb   :  { %v1074_v43 = vpop.eup %1073  ;;  %778 = vst.msk [vmem:[#allocation7] sm:$0xf] %vm777_vm1, %v872_v40  ;;  %v873_v44 = vpack.c.bf16 %v701_v41, %v701_v41 }
 0x3cc   :  { %v1076_v45 = vpop.eup %1075  ;;  %781 = vst.msk [vmem:[#allocation7 + $0xc] sm:$0xf] %vm777_vm1, %v875_v42  ;;  %v698_v46 = vmul.f32 0.5, %v1074_v43 }
 0x3cd   :  { %v1078_v47 = vpop.eup %1077  ;;  %779 = vst.msk [vmem:[#allocation7 + $0x4] sm:$0xf] %vm777_vm1, %v873_v44  ;;  %v696_v48 = vmul.f32 0.5, %v1076_v45 }
 0x3ce   :  { %v1080_v49 = vpop.eup %1079  ;;  %v706_v50 = vadd.f32 0.5, %v698_v46  ;;  %v699_v51 = vmul.f32 0.5, %v1078_v47 }
 0x3cf   :  { %v704_v52 = vadd.f32 0.5, %v696_v48  ;;  %v697_v53 = vmul.f32 0.5, %v1080_v49 }
 0x3d0   :  { %v878_v54 = vpack.c.bf16 %v706_v50, %v706_v50  ;;  %v707_v55 = vadd.f32 0.5, %v699_v51 }
 0x3d1   :  { %v876_v56 = vpack.c.bf16 %v704_v52, %v704_v52  ;;  %v705_v57 = vadd.f32 0.5, %v697_v53 }
 0x3d2   :  { %784 = vst.msk [vmem:[#allocation7 + $0x18] sm:$0xf] %vm777_vm1, %v878_v54  ;;  %v879_v58 = vpack.c.bf16 %v707_v55, %v707_v55 }
 0x3d3   :  { %782 = vst.msk [vmem:[#allocation7 + $0x10] sm:$0xf] %vm777_vm1, %v876_v56  ;;  %v877_v59 = vpack.c.bf16 %v705_v57, %v705_v57 }
 0x3d4   :  { %785 = vst.msk [vmem:[#allocation7 + $0x1c] sm:$0xf] %vm777_vm1, %v879_v58 }
 0x3d5   :  { %783 = vst.msk [vmem:[#allocation7 + $0x14] sm:$0xf] %vm777_vm1, %v877_v59 }
 0x3d6   :  { %1136 = shalt.err (!%p1133_p6)
}
 0x3d7   :  { %s1137_s3 = scalar_lea.hbm %s1380_s10, 512 }
 0x3d8   :  { %p1138_p7 = scmp.ne.s32.totalorder %s1380_s10, %s1137_s3  ;;  %p1141_p8 = scmp.lt.u32.totalorder %s1137_s3, %s1380_s10 }
 0x3da   :  { %p1143_p9 = pnand %p1141_p8, %p1138_p7 }
 0x3dc   :  { %1146 = shalt.err (!%p1143_p9)
}
 0x3dd   :  { %799 = dma.vmem_to_hbm [thread:$0]  %s794_s16, 512, %s1380_s10, [#allocation4], %s1154_s23, %s1154_s23, %s1155_s24  }
 0x3de   :  { %1151 = dma.done.wait [#allocation4], 512  }
 0x3df   :  { %1152 = vsyncadd [#allocation4], 4294966784 }
 0x3e0   :  { %805 = vsyncpa [#allocation3], 1 }
 0x3e1   :  { %806 = vsyncpa [#allocation6], 1 }
 0x3e2   :  { %807 = vsyncpa [#allocation4], 1 }

</bundles_post_ra>
